<compile_context>
chip_gen: v6e
topology: v6e:2x2x1
jax: 0.10.0
libtpu: 0.0.40
codegen_flags: <defaults>
</compile_context>

<pallas_src>
import jax
import jax.numpy as jnp
from jax import lax
from jax.experimental import pallas as pl
from jax.experimental.pallas import tpu as pltpu

NNODES = 16
DIM = 32
K = 4
ALPHA = 3.0


def _graph_constructor_kernel(idx_ref, emb_ref, w_ref, b_ref, adj_ref):
    n = adj_ref.shape[0]          # number of selected nodes (len(idx))
    nnodes = emb_ref.shape[0]     # embedding-table rows
    dim2 = emb_ref.shape[1]       # 2 * DIM (fused emb1|emb2)
    dim = dim2 // 2

    # --- fused embedding gather: one-hot row-selection matrix on the MXU ----
    idx_col = idx_ref[...]                                       # (n, 1) int32
    iota = lax.broadcasted_iota(jnp.int32, (n, nnodes), 1)       # (n, NNODES)
    p = (idx_col == iota).astype(jnp.float32)                    # one-hot rows

    # single gather matmul over the concatenated table -> (n, 2*DIM)
    e_cat = jnp.dot(p, emb_ref[...], preferred_element_type=jnp.float32)

    # --- fused linear + tanh (block-diagonal weight, concatenated bias) -----
    nv_cat = jnp.tanh(ALPHA * (jnp.dot(e_cat, w_ref[...],
                                       preferred_element_type=jnp.float32)
                               + b_ref[...]))                    # (n, 2*DIM)

    nv1 = nv_cat[:, :dim]          # lane slice (sub-128) — cheaper than a dot
    nv2 = nv_cat[:, dim:]

    # --- a = nv1 @ nv2.T - nv2 @ nv1.T via antisymmetry: a = M - M.T --------
    dn = (((1,), (1,)), ((), ()))  # contract over the embedding dim
    m = lax.dot_general(nv1, nv2, dn, preferred_element_type=jnp.float32)
    a = m - m.T                    # single MXU push + XLU transpose

    adj = jnp.maximum(jnp.tanh(ALPHA * a), 0.0)

    # --- per-row k-th largest threshold (K small & static -> unrolled, XLU) -
    work = adj
    kth = jnp.max(work, axis=1, keepdims=True)
    for _ in range(K - 1):
        work = jnp.where(work >= kth, jnp.float32(-1e30), work)
        kth = jnp.max(work, axis=1, keepdims=True)

    adj_ref[...] = jnp.where(adj >= kth, adj, 0.0)


def graph_constructor_forward(idx, emb1, emb2, w1, b1, w2, b2):
    """idx: (n,) int32 node indices.  Returns (n, n) f32 adjacency matrix.

    Weights are stored as (dim_in, dim_out) = PyTorch Linear.weight.T so the
    kernel computes x @ W + b.  emb1/emb2 are the Embedding tables
    (nnodes, dim).  The operand packing below is pure weight preprocessing
    (could be hoisted to module init).
    """
    n = idx.shape[0]
    dim = emb1.shape[1]

    # fused embedding table (NNODES, 2*DIM)
    emb_cat = jnp.concatenate(
        [emb1.astype(jnp.float32), emb2.astype(jnp.float32)], axis=1)

    # block-diagonal weight (2*DIM, 2*DIM) and concatenated bias (1, 2*DIM)
    w_blk = jnp.zeros((2 * dim, 2 * dim), jnp.float32)
    w_blk = w_blk.at[:dim, :dim].set(w1.astype(jnp.float32))
    w_blk = w_blk.at[dim:, dim:].set(w2.astype(jnp.float32))
    b_cat = jnp.concatenate(
        [b1.astype(jnp.float32), b2.astype(jnp.float32)]).reshape(1, 2 * dim)

    vmem = lambda: pl.BlockSpec(memory_space=pltpu.MemorySpace.VMEM)

    return pl.pallas_call(
        _graph_constructor_kernel,
        out_shape=jax.ShapeDtypeStruct((n, n), jnp.float32),
        in_specs=[vmem() for _ in range(4)],
        out_specs=vmem(),
    )(idx.astype(jnp.int32).reshape(n, 1), emb_cat, w_blk, b_cat)


def _reference(idx, emb1, emb2, w1, b1, w2, b2):
    """Pure-JAX reference with identical top-k threshold semantics."""
    e1 = emb1[idx, :]
    e2 = emb2[idx, :]
    nv1 = jnp.tanh(ALPHA * (e1 @ w1 + b1))
    nv2 = jnp.tanh(ALPHA * (e2 @ w2 + b2))
    a = nv1 @ nv2.T - nv2 @ nv1.T
    adj = jax.nn.relu(jnp.tanh(ALPHA * a))
    work = adj
    kth = jnp.max(work, axis=1, keepdims=True)
    for _ in range(K - 1):
        work = jnp.where(work >= kth, -1e30, work)
        kth = jnp.max(work, axis=1, keepdims=True)
    return adj * (adj >= kth)


if __name__ == "__main__":
    key = jax.random.PRNGKey(0)
    k_emb1, k_emb2, k_w1, k_b1, k_w2, k_b2, k_perm = jax.random.split(key, 7)

    # Synthetic parameters matching the module __init__ with static_feat=None:
    # two Embedding(nnodes, dim), two Linear(dim, dim).
    emb1 = jax.random.normal(k_emb1, (NNODES, DIM), jnp.float32)
    emb2 = jax.random.normal(k_emb2, (NNODES, DIM), jnp.float32)
    w1 = jax.random.normal(k_w1, (DIM, DIM), jnp.float32) * 0.1   # (in, out)
    b1 = jax.random.normal(k_b1, (DIM,), jnp.float32) * 0.1
    w2 = jax.random.normal(k_w2, (DIM, DIM), jnp.float32) * 0.1   # (in, out)
    b2 = jax.random.normal(k_b2, (DIM,), jnp.float32) * 0.1

    # idx: a permutation of the nodes.
    idx = jax.random.permutation(k_perm, NNODES).astype(jnp.int32)

    adj = graph_constructor_forward(idx, emb1, emb2, w1, b1, w2, b2)
    adj = jax.block_until_ready(adj)

    ref = _reference(idx, emb1, emb2, w1, b1, w2, b2)
    assert adj.shape == (NNODES, NNODES)
    assert jnp.allclose(adj, ref, atol=1e-5, rtol=1e-5)

    print("KERNEL_OK")
</pallas_src>

<mosaic_0001>
module attributes {stable_mosaic.version = 11 : i64} {
  func.func @_graph_constructor_kernel(%arg0: memref<16x1xi32, #tpu.memory_space<vmem>>, %arg1: memref<16x64xf32, #tpu.memory_space<vmem>>, %arg2: memref<64x64xf32, #tpu.memory_space<vmem>>, %arg3: memref<1x64xf32, #tpu.memory_space<vmem>>, %arg4: memref<16x16xf32, #tpu.memory_space<vmem>>) attributes {dimension_semantics = [], scalar_prefetch = 0 : i64, scratch_operands = 0 : i64, tpu.core_type = #tpu.core_type<tc>} {
    %c0 = arith.constant 0 : index
    %c0_0 = arith.constant 0 : index
    %0 = vector.load %arg0[%c0, %c0_0] : memref<16x1xi32, #tpu.memory_space<vmem>>, vector<16x1xi32>
    %1 = tpu.iota {dimensions = array<i32: 1>} : vector<16x16xi32>
    %2 = vector.broadcast %0 : vector<16x1xi32> to vector<16x16xi32>
    %3 = arith.cmpi eq, %2, %1 : vector<16x16xi32>
    %4 = arith.extui %3 : vector<16x16xi1> to vector<16x16xi32>
    %5 = arith.sitofp %4 : vector<16x16xi32> to vector<16x16xf32>
    %c0_1 = arith.constant 0 : index
    %c0_2 = arith.constant 0 : index
    %6 = vector.load %arg1[%c0_1, %c0_2] : memref<16x64xf32, #tpu.memory_space<vmem>>, vector<16x64xf32>
    %cst = arith.constant dense<0.000000e+00> : vector<16x64xf32>
    %7 = tpu.matmul %5, %6, %cst {dimension_numbers = #tpu.dot_dimension_numbers<[1], [0], [0], [1], [0, 0, 1, 1], [], []>} : vector<16x16xf32>, vector<16x64xf32>, vector<16x64xf32> -> vector<16x64xf32>
    %c0_3 = arith.constant 0 : index
    %c0_4 = arith.constant 0 : index
    %8 = vector.load %arg2[%c0_3, %c0_4] : memref<64x64xf32, #tpu.memory_space<vmem>>, vector<64x64xf32>
    %cst_5 = arith.constant dense<0.000000e+00> : vector<16x64xf32>
    %9 = tpu.matmul %7, %8, %cst_5 {dimension_numbers = #tpu.dot_dimension_numbers<[1], [0], [0], [1], [0, 0, 1, 1], [], []>} : vector<16x64xf32>, vector<64x64xf32>, vector<16x64xf32> -> vector<16x64xf32>
    %c0_6 = arith.constant 0 : index
    %c0_7 = arith.constant 0 : index
    %10 = vector.load %arg3[%c0_6, %c0_7] : memref<1x64xf32, #tpu.memory_space<vmem>>, vector<1x64xf32>
    %11 = vector.broadcast %10 : vector<1x64xf32> to vector<16x64xf32>
    %12 = arith.addf %9, %11 : vector<16x64xf32>
    %cst_8 = arith.constant 3.000000e+00 : f32
    %13 = vector.broadcast %cst_8 : f32 to vector<16x64xf32>
    %14 = arith.mulf %13, %12 : vector<16x64xf32>
    %15 = math.tanh %14 : vector<16x64xf32>
    %16 = vector.extract_strided_slice %15 {offsets = [0, 0], sizes = [16, 32], strides = [1, 1]} : vector<16x64xf32> to vector<16x32xf32>
    %17 = vector.extract_strided_slice %15 {offsets = [0, 32], sizes = [16, 32], strides = [1, 1]} : vector<16x64xf32> to vector<16x32xf32>
    %cst_9 = arith.constant dense<0.000000e+00> : vector<16x16xf32>
    %18 = tpu.matmul %16, %17, %cst_9 {dimension_numbers = #tpu.dot_dimension_numbers<[1], [1], [0], [0], [0, 0, 1, 0], [], []>} : vector<16x32xf32>, vector<16x32xf32>, vector<16x16xf32> -> vector<16x16xf32>
    %19 = tpu.transpose %18, [1, 0] : vector<16x16xf32> -> vector<16x16xf32>
    %20 = arith.subf %18, %19 : vector<16x16xf32>
    %cst_10 = arith.constant 3.000000e+00 : f32
    %21 = vector.broadcast %cst_10 : f32 to vector<16x16xf32>
    %22 = arith.mulf %21, %20 : vector<16x16xf32>
    %23 = math.tanh %22 : vector<16x16xf32>
    %cst_11 = arith.constant 0.000000e+00 : f32
    %24 = vector.broadcast %cst_11 : f32 to vector<16x16xf32>
    %25 = arith.maximumf %23, %24 : vector<16x16xf32>
    %cst_12 = arith.constant dense<0xFF800000> : vector<16xf32>
    %26 = vector.multi_reduction <maximumf>, %25, %cst_12 [1] : vector<16x16xf32> to vector<16xf32>
    %27 = vector.shape_cast %26 : vector<16xf32> to vector<16x1xf32>
    %28 = vector.broadcast %27 : vector<16x1xf32> to vector<16x16xf32>
    %29 = arith.cmpf oge, %25, %28 : vector<16x16xf32>
    %cst_13 = arith.constant -1.000000e+30 : f32
    %30 = vector.broadcast %cst_13 : f32 to vector<16x16xf32>
    %31 = arith.select %29, %30, %25 : vector<16x16xi1>, vector<16x16xf32>
    %cst_14 = arith.constant dense<0xFF800000> : vector<16xf32>
    %32 = vector.multi_reduction <maximumf>, %31, %cst_14 [1] : vector<16x16xf32> to vector<16xf32>
    %33 = vector.shape_cast %32 : vector<16xf32> to vector<16x1xf32>
    %34 = vector.broadcast %33 : vector<16x1xf32> to vector<16x16xf32>
    %35 = arith.cmpf oge, %31, %34 : vector<16x16xf32>
    %cst_15 = arith.constant -1.000000e+30 : f32
    %36 = vector.broadcast %cst_15 : f32 to vector<16x16xf32>
    %37 = arith.select %35, %36, %31 : vector<16x16xi1>, vector<16x16xf32>
    %cst_16 = arith.constant dense<0xFF800000> : vector<16xf32>
    %38 = vector.multi_reduction <maximumf>, %37, %cst_16 [1] : vector<16x16xf32> to vector<16xf32>
    %39 = vector.shape_cast %38 : vector<16xf32> to vector<16x1xf32>
    %40 = vector.broadcast %39 : vector<16x1xf32> to vector<16x16xf32>
    %41 = arith.cmpf oge, %37, %40 : vector<16x16xf32>
    %cst_17 = arith.constant -1.000000e+30 : f32
    %42 = vector.broadcast %cst_17 : f32 to vector<16x16xf32>
    %43 = arith.select %41, %42, %37 : vector<16x16xi1>, vector<16x16xf32>
    %cst_18 = arith.constant dense<0xFF800000> : vector<16xf32>
    %44 = vector.multi_reduction <maximumf>, %43, %cst_18 [1] : vector<16x16xf32> to vector<16xf32>
    %45 = vector.shape_cast %44 : vector<16xf32> to vector<16x1xf32>
    %46 = vector.broadcast %45 : vector<16x1xf32> to vector<16x16xf32>
    %47 = arith.cmpf oge, %25, %46 : vector<16x16xf32>
    %cst_19 = arith.constant 0.000000e+00 : f32
    %48 = vector.broadcast %cst_19 : f32 to vector<16x16xf32>
    %49 = arith.select %47, %25, %48 : vector<16x16xi1>, vector<16x16xf32>
    %c0_20 = arith.constant 0 : index
    %c0_21 = arith.constant 0 : index
    %50 = vector.load %arg4[%c0_20, %c0_21] : memref<16x16xf32, #tpu.memory_space<vmem>>, vector<16x16xf32>
    tpu.vector_store %arg4[%c0_20, %c0_21], %49 {strides = array<i32>} : memref<16x16xf32, #tpu.memory_space<vmem>>, vector<16x16xf32>,
    return
  }
}

</mosaic_0001>

<bundles_post_ra>
// kernel: tpu_custom_call.1
= control target key start
LH: loop header
LB: loop body
LE: loop exit
PB: predicated region body
PF: predicated region fallthrough
CT: control target
= control target key end

     0   :  { %9 = vsyncpa [#allocation3], 0  ;;  %s615_s0 = inlined_call_operand.vmem [shape: s32[16,1], index: 0, kind: input, shape index: {}]   ;;  %s616_s1 = inlined_call_operand.vmem [shape: f32[16,64], index: 1, kind: input, shape index: {}]   ;;  %s617_s2 = inlined_call_operand.hbm [shape: f32[64,64], index: 2, kind: input, shape index: {}]   ;;  %s618_s3 = inlined_call_operand.vmem [shape: f32[1,64], index: 3, kind: input, shape index: {}]   ;;  %s619_s4 = inlined_call_operand.hbm [shape: f32[16,16], index: 4, kind: output, shape index: {}]  }
   0x1   :  { %10 = vsyncpa [#allocation4], 0  ;;  %s544_s15 = smov [#allocation2]  }
   0x2   :  { %s20_s16 = sshll.u32 %s544_s15, 4  ;;  %s21_s16 = int_to_ptr.vmem [resolvable:$true] %s20_s16 }
   0x3   :  { %s508_s17 = scalar_lea.vmem %s21_s16, 1024  ;;  %p513_p1 = scmp.lt.s32.totalorder %s21_s16, %s21_s16 }
   0x4   :  { %p509_p0 = scmp.ne.s32.totalorder %s21_s16, %s508_s17  ;;  %p514_p2 = scmp.lt.s32.totalorder %s508_s17, %s508_s17 }
   0x6   :  { %p515_p3 = por %p514_p2, %p513_p1 }
   0x8   :  { %p516_p4 = pnand %p515_p3, %p509_p0 }
   0xa   :  { %519 = shalt.err (!%p516_p4)
}
   0xb   :  { %s545_s18 = smov 128   ;;  %s546_s19 = smov 8  }
   0xc   :  { %26 = dma.hbm_to_vmem [thread:$0]  %s617_s2, 1024, %s21_s16, [#allocation3], %s545_s18, %s545_s18, %s546_s19  }
   0xd   :  { %540 = dma.done.wait [#allocation3], 1024  }
   0xe   :  { %541 = vsyncadd [#allocation3], 4294966272  ;;  %v547_v0 = vmov 0   ;;  %v32_v1 = vld [vmem:[%s615_s0] sm:$0xff]  ;;  %v49_v2 = vld [vmem:[%s616_s1 + $0x8] sm:$0xff]  ;;  %v34_v11 = vlaneseq  ;;  %vm50_vm0 = vcmask 130048  }
   0xf   :  { %491 = vset.pattern.permute.xlu0 %v547_v0  ;;  %451 = vmatprep.subr.mxu0 %v49_v2  ;;  %v48_v3 = vld [vmem:[%s616_s1] sm:$0xff]  ;;  %v33_v4 = vld [vmem:[%s615_s0 + $0x8] sm:$0xff]  ;;  %v139_v5 = vld [vmem:[#allocation2 + $0x38] sm:$0xff]  ;;  %v548_v14 = vmov 0.0   ;;  %vm147_vm3 = vcmask 523264   ;;  %vm239_vm4 = vcmask 261120  }
  0x10   :  { %37 = vperm.xlu0 %491, %v32_v1   ;;  %452 = vmatpush3.msra.mxu0 %v49_v2  ;;  %v138_v6 = vld [vmem:[#allocation2 + $0x30] sm:$0xff]  ;;  %v137_v7 = vld [vmem:[#allocation2 + $0x28] sm:$0xff]  ;;  %v136_v8 = vld [vmem:[#allocation2 + $0x20] sm:$0xff]  ;;  %v35_v12 = vand.u32 127, %v34_v11  ;;  %s549_s29 = smov 96  }
  0x11   :  { %453 = vmatprep.subr.mxu0 %v48_v3  ;;  %458 = vmatprep.subr.mxu1 %v139_v5  ;;  %v135_v9 = vld [vmem:[#allocation2 + $0x18] sm:$0xff]  ;;  %v134_v10 = vld [vmem:[#allocation2 + $0x10] sm:$0xff]  ;;  %v133_v18 = vld [vmem:[#allocation2 + $0x8] sm:$0xff] }
  0x12   :  { %454 = vmatpush3.msra.mxu0 %v48_v3  ;;  %459 = vmatpush3.msra.mxu1 %v139_v5  ;;  %v132_v19 = vld [vmem:[#allocation2] sm:$0xff] }
  0x13   :  { %460 = vmatprep.subr.mxu1 %v138_v6  ;;  %v426_v22 = vld [vmem:[%s618_s3] ss:$0 sm:$0xff]  ;;  %s550_s3 = smov [#allocation5]  }
  0x14   :  { %40 = vperm.xlu0 %491, %v33_v4   ;;  %461 = vmatpush3.msra.mxu1 %v138_v6  ;;  %s410_s30 = sshll.u32 %s550_s3, 4  ;;  %s411_s30 = int_to_ptr.vmem [resolvable:$true] %s410_s30 }
  0x15   :  { %462 = vmatprep.subr.mxu1 %v137_v7  ;;  %s520_s5 = scalar_lea.vmem %s411_s30, 256  ;;  %p525_p6 = scmp.lt.s32.totalorder %s411_s30, %s411_s30 }
  0x16   :  { %463 = vmatpush3.msra.mxu1 %v137_v7  ;;  %p521_p5 = scmp.ne.s32.totalorder %s411_s30, %s520_s5  ;;  %p526_p7 = scmp.lt.s32.totalorder %s520_s5, %s520_s5 }
  0x17   :  { %464 = vmatprep.subr.mxu1 %v136_v8 }
  0x18   :  { %465 = vmatpush3.msra.mxu1 %v136_v8  ;;  %p527_p8 = por %p526_p7, %p525_p6 }
  0x19   :  { %466 = vmatprep.subr.mxu1 %v135_v9 }
  0x1a   :  { %467 = vmatpush3.msra.mxu1 %v135_v9  ;;  %p528_p9 = pnand %p527_p8, %p521_p5 }
  0x1b   :  { %468 = vmatprep.subr.mxu1 %v134_v10 }
  0x1c   :  { %469 = vmatpush3.msra.mxu1 %v134_v10 }
  0x1d   :  { %470 = vmatprep.subr.mxu1 %v133_v18 }
  0x1e   :  { %471 = vmatpush3.msra.mxu1 %v133_v18 }
  0x1f   :  { %472 = vmatprep.subr.mxu1 %v132_v19 }
  0x20   :  { %473 = vmatpush3.msra.mxu1 %v132_v19 }
  0x8b   :  { %v38_v13 = vpop.permute.xlu0 %37 }
  0x8c   :  { %vm42_vm1 = vcmp.eq.s32.totalorder %v38_v13, %v35_v12 }
  0x8d   :  { %v422_v15 = vsel %vm42_vm1, 1.0, %v548_v14 }
  0x8e   :  { %455 = vmatprep.mubr.msk.f32.mxu0 %vm50_vm0, %v422_v15 }
  0x8f   :  { %v41_v16 = vpop.permute.xlu0 %40 }
  0x90   :  { %vm43_vm2 = vcmp.eq.s32.totalorder %v41_v16, %v35_v12 }
  0x91   :  { %v423_v17 = vsel %vm43_vm2, 1.0, %v548_v14 }
  0x92   :  { %456 = vmatmul.mubr.msk.f32.vlgmr.msra.gmra.mxu0 %vm50_vm0, %v423_v17 }
 0x152   :  { %v457_v20 = vpop.f32.mrf.mxu0 }
 0x154   :  { %v123_v21 = vpop.f32.mrf.mxu0 }
 0x155   :  { %474 = vmatprep.mubr.msk.f32.mxu1 %vm147_vm3, %v123_v21 }
 0x156   :  { %475 = vmatmul.mubr.msk.f32.vlgmr.msra.gmra.mxu1 %vm147_vm3, %v457_v20 }
 0x216   :  { %v476_v23 = vpop.f32.mrf.mxu1 }
 0x217   :  { %v226_v24 = vadd.f32 %v476_v23, %v426_v22 }
 0x218   :  { %v220_v25 = vpop.f32.mrf.mxu1 }
 0x219   :  { %v230_v26 = vmul.f32 3.0, %v226_v24  ;;  %v221_v27 = vadd.f32 %v426_v22, %v220_v25 }
 0x21b   :  { %492 = vtanh.f32 %v230_v26  ;;  %v229_v28 = vmul.f32 3.0, %v221_v27 }
 0x21d   :  { %494 = vtanh.f32 %v229_v28 }
 0x228   :  { %v493_v29 = vpop.eup %492 }
 0x229   :  { %237 = vrot.lane.b32.xlu1 %v493_v29, %s549_s29 }
 0x22a   :  { %v495_v30 = vpop.eup %494 }
 0x22b   :  { %481 = vmatprep.mubr.msk.f32.mxu0 %vm239_vm4, %v495_v30 }
 0x22d   :  { %235 = vrot.lane.b32.xlu1 %v495_v30, %s549_s29 }
 0x29b   :  { %v238_v31 = vpop.permute.xlu1 %237 }
 0x29c   :  { %477 = vmatprep.subr.msk.mxu0 %vm239_vm4, %v238_v31 }
 0x29d   :  { %478 = vmatpush3.xpose.msk.msra.mxu0 %vm239_vm4, %v238_v31 }
 0x29f   :  { %v236_v32 = vpop.permute.xlu1 %235 }
 0x2a0   :  { %479 = vmatprep.subr.msk.mxu0 %vm239_vm4, %v236_v32 }
 0x2a1   :  { %480 = vmatpush3.xpose.msk.msra.mxu0 %vm239_vm4, %v236_v32 }
 0x2a4   :  { %482 = vmatmul.mubr.msk.f32.vlgmr.msra.gmra.mxu0 %vm239_vm4, %v493_v29 }
 0x364   :  { %v483_v33 = vpop.f32.mrf.mxu0 }
 0x366   :  { %v314_v34 = vpop.f32.mrf.mxu0 }
 0x367   :  { %323 = vxpose.xlu0.b32.start [1/2] (short) (narrow) %v314_v34, 16 }
 0x36b   :  { %324 = vxpose.xlu0.b32.end [2/2] (short) (narrow) %v483_v33, 16 }
 0x3e3   :  { %v339_v35 = vpop.trf.xlu0 }
 0x3e4   :  { %v355_v36 = vsub.f32 %v314_v34, %v339_v35 }
 0x3e6   :  { %v357_v37 = vmul.f32 3.0, %v355_v36 }
 0x3e7   :  { %v340_v38 = vpop.trf.xlu0 }
 0x3e8   :  { %496 = vtanh.f32 %v357_v37  ;;  %v356_v39 = vsub.f32 %v483_v33, %v340_v38 }
 0x3ea   :  { %v358_v40 = vmul.f32 3.0, %v356_v39 }
 0x3ec   :  { %498 = vtanh.f32 %v358_v40 }
 0x3f5   :  { %v497_v41 = vpop.eup %496 }
 0x3f6   :  { %v361_v42 = vmax.f32 %v497_v41, 0.0 }
 0x3f8   :  { %v363_v43 = vsel %vm50_vm0, %v361_v42, -inf }
 0x3f9   :  { %v499_v44 = vpop.eup %498  ;;  %364 = vmax.xlane.f32.xlu1 %v363_v43 }
 0x3fa   :  { %v362_v45 = vmax.f32 %v499_v44, 0.0 }
 0x3fc   :  { %v366_v46 = vsel %vm50_vm0, %v362_v45, -inf }
 0x3fd   :  { %367 = vmax.xlane.f32.xlu0 %v366_v46 }
 0x482   :  { %v365_v47 = vpop.xlane.xlu1 %364 }
 0x483   :  { %vm369_vm5 = vcmp.ge.f32.partialorder %v361_v42, %v365_v47 }
 0x484   :  { %v371_v48 = vsel %vm369_vm5, -1e+30, %v361_v42 }
 0x485   :  { %v373_v49 = vsel %vm50_vm0, %v371_v48, -inf }
 0x486   :  { %374 = vmax.xlane.f32.xlu1 %v373_v49  ;;  %v368_v50 = vpop.xlane.xlu0 %367 }
 0x487   :  { %vm370_vm6 = vcmp.ge.f32.partialorder %v362_v45, %v368_v50 }
 0x488   :  { %v372_v51 = vsel %vm370_vm6, -1e+30, %v362_v45 }
 0x489   :  { %v376_v52 = vsel %vm50_vm0, %v372_v51, -inf }
 0x48a   :  { %377 = vmax.xlane.f32.xlu1 %v376_v52 }
 0x50f   :  { %v375_v53 = vpop.xlane.xlu1 %374 }
 0x510   :  { %vm379_vm7 = vcmp.ge.f32.partialorder %v371_v48, %v375_v53 }
 0x511   :  { %v381_v54 = vsel %vm379_vm7, -1e+30, %v371_v48 }
 0x512   :  { %v383_v55 = vsel %vm50_vm0, %v381_v54, -inf }
 0x513   :  { %384 = vmax.xlane.f32.xlu1 %v383_v55  ;;  %v378_v56 = vpop.xlane.xlu1 %377 }
 0x514   :  { %vm380_vm8 = vcmp.ge.f32.partialorder %v372_v51, %v378_v56 }
 0x515   :  { %v382_v57 = vsel %vm380_vm8, -1e+30, %v372_v51 }
 0x516   :  { %v386_v58 = vsel %vm50_vm0, %v382_v57, -inf }
 0x517   :  { %387 = vmax.xlane.f32.xlu1 %v386_v58 }
 0x59c   :  { %v385_v59 = vpop.xlane.xlu1 %384 }
 0x59d   :  { %vm389_vm9 = vcmp.ge.f32.partialorder %v381_v54, %v385_v59 }
 0x59e   :  { %v391_v60 = vsel %vm389_vm9, -1e+30, %v381_v54 }
 0x59f   :  { %v393_v61 = vsel %vm50_vm0, %v391_v60, -inf }
 0x5a0   :  { %394 = vmax.xlane.f32.xlu1 %v393_v61  ;;  %v388_v62 = vpop.xlane.xlu1 %387 }
 0x5a1   :  { %vm390_vm10 = vcmp.ge.f32.partialorder %v382_v57, %v388_v62 }
 0x5a2   :  { %v392_v63 = vsel %vm390_vm10, -1e+30, %v382_v57 }
 0x5a3   :  { %v396_v0 = vsel %vm50_vm0, %v392_v63, -inf }
 0x5a4   :  { %397 = vmax.xlane.f32.xlu1 %v396_v0 }
 0x629   :  { %v395_v1 = vpop.xlane.xlu1 %394 }
 0x62a   :  { %vm399_vm11 = vcmp.ge.f32.partialorder %v361_v42, %v395_v1 }
 0x62b   :  { %v401_v2 = vsel %vm399_vm11, %v361_v42, 0.0 }
 0x62c   :  { %403 = vst.msk [vmem:[#allocation5] sm:$0xff] %vm50_vm0, %v401_v2 }
 0x62d   :  { %v398_v3 = vpop.xlane.xlu1 %397 }
 0x62e   :  { %vm400_vm12 = vcmp.ge.f32.partialorder %v362_v45, %v398_v3 }
 0x62f   :  { %v402_v4 = vsel %vm400_vm12, %v362_v45, 0.0 }
 0x630   :  { %404 = vst.msk [vmem:[#allocation5 + $0x8] sm:$0xff] %vm50_vm0, %v402_v4 }
 0x631   :  { %531 = shalt.err (!%p528_p9)
}
 0x632   :  { %416 = dma.vmem_to_hbm [thread:$0]  %s411_s30, 256, %s619_s4, [#allocation4], %s545_s18, %s545_s18, %s546_s19  }
 0x633   :  { %542 = dma.done.wait [#allocation4], 256  }
 0x634   :  { %543 = vsyncadd [#allocation4], 4294967040 }
 0x635   :  { %420 = vsyncpa [#allocation3], 1 }
 0x636   :  { %421 = vsyncpa [#allocation4], 1 }

</bundles_post_ra>
